<compile_context>
chip_gen: v6e
topology: v6e:2x2x1
jax: 0.10.0
libtpu: 0.0.40
codegen_flags: <defaults>
</compile_context>

<pallas_src>
import jax
import jax.numpy as jnp
from jax.experimental import pallas as pl
from jax.experimental.pallas import tpu as pltpu


def _round_up(x, m):
    return ((x + m - 1) // m) * m


def fair_chest_xray_kernel(
    x_ref,       # [TB, C, THW] bf16  image chunk (spatial dims flattened, zero-padded)
    gid_ref,     # [TB, 1]      i32   identity group index per sample
    wb_ref,      # [C, F]       f32   synthetic base-model weight (1/HW folded in)
    bb_ref,      # [1, F]       f32   synthetic base-model bias
    finms_ref,   # [G, 2F]      f32   FIN [mean | std] table (concatenated)
    wfc_ref,     # [F, 128]     f32   fc weight, zero-padded to 128 output lanes
    bfc_ref,     # [1, 128]     f32   fc bias, zero-padded
    out_ref,     # [TB, 128]    f32   lane-dense logits block
    gap_acc,     # [TB, C]      f32   VMEM scratch: running GAP sum over HW chunks
):
    k = pl.program_id(1)

    @pl.when(k == 0)
    def _():
        gap_acc[...] = jnp.zeros_like(gap_acc)

    # Partial global-average-pool sum over this HW chunk (bf16 DMA, f32 accumulate).
    gap_acc[...] += jnp.sum(x_ref[...].astype(jnp.float32), axis=-1)

    @pl.when(k == pl.num_programs(1) - 1)
    def _():
        # Synthetic base_model head: GAP (scale folded into wb) + Linear(C, F).
        feats = jnp.dot(gap_acc[...], wb_ref[...],
                        preferred_element_type=jnp.float32) + bb_ref[...]     # [TB, F]

        # FairIdentityNormalization: gather per-sample (mean, std) with a single
        # one-hot [TB, G] @ [G, 2F] matmul (exact for gid in [0, G)).
        gid = gid_ref[...]                                     # [TB, 1] int32
        tb = gid.shape[0]
        g = finms_ref.shape[0]
        f = wb_ref.shape[1]
        iota = jax.lax.broadcasted_iota(jnp.int32, (tb, g), 1)
        onehot = (iota == gid).astype(jnp.float32)             # [TB, G]
        stats = jnp.dot(onehot, finms_ref[...],
                        preferred_element_type=jnp.float32)    # [TB, 2F]
        mean_b = stats[:, :f]
        std_b = stats[:, f:]
        normed = (feats - mean_b) * pl.reciprocal(std_b + 1e-5, approx=True)

        # fc head (lane-padded to 128 output columns; real logits live at [:, :14]).
        out_ref[...] = jnp.dot(normed, wfc_ref[...],
                               preferred_element_type=jnp.float32) + bfc_ref[...]


def fair_chest_xray_forward(x_nchw, identity_group, params, *, num_classes=14):
    """x_nchw: [B, C, H, W] f32; identity_group: [B] int."""
    B, C, H, W = x_nchw.shape
    HW = H * W
    F = params["w_base"].shape[1]

    # --- tiling ---
    TB = min(128, _round_up(B, 8))          # batch tile (sublane-aligned)
    B_pad = _round_up(B, TB)
    THW = min(_round_up(HW, 128), 2048)     # HW reduction chunk (lane-aligned)
    HW_pad = _round_up(HW, THW)
    OUT_PAD = 128                           # lane-dense logits block width

    # --- parameter prep (glue, outside the kernel) ---
    wb = (params["w_base"] / float(HW)).astype(jnp.float32)    # fold 1/HW of the GAP
    bb = params["b_base"].astype(jnp.float32)
    finms = jnp.concatenate(
        [params["fin_mean"], params["fin_std"]], axis=1).astype(jnp.float32)   # [G, 2F]
    wfc = jnp.zeros((F, OUT_PAD), jnp.float32).at[:, :num_classes].set(params["w_fc"])
    bfc = jnp.zeros((1, OUT_PAD), jnp.float32).at[:, :num_classes].set(params["b_fc"])

    # --- input prep: flatten spatial dims, zero-pad, cast the big tensor to bf16 ---
    x_flat = x_nchw.reshape(B, C, HW)
    x_pad = jnp.zeros((B_pad, C, HW_pad), jnp.bfloat16)
    x_pad = x_pad.at[:B, :, :HW].set(x_flat.astype(jnp.bfloat16))
    gid = jnp.zeros((B_pad, 1), jnp.int32).at[:B, 0].set(identity_group.astype(jnp.int32))

    grid = (B_pad // TB, HW_pad // THW)

    out = pl.pallas_call(
        fair_chest_xray_kernel,
        out_shape=jax.ShapeDtypeStruct((B_pad, OUT_PAD), jnp.float32),
        grid_spec=pltpu.PrefetchScalarGridSpec(
            num_scalar_prefetch=0,
            grid=grid,
            in_specs=[
                pl.BlockSpec((TB, C, THW), lambda i, k: (i, 0, k)),   # x chunks
                pl.BlockSpec((TB, 1), lambda i, k: (i, 0)),           # gid
                pl.BlockSpec(wb.shape, lambda i, k: (0, 0)),
                pl.BlockSpec(bb.shape, lambda i, k: (0, 0)),
                pl.BlockSpec(finms.shape, lambda i, k: (0, 0)),
                pl.BlockSpec(wfc.shape, lambda i, k: (0, 0)),
                pl.BlockSpec(bfc.shape, lambda i, k: (0, 0)),
            ],
            out_specs=pl.BlockSpec((TB, OUT_PAD), lambda i, k: (i, 0)),
            scratch_shapes=[pltpu.VMEM((TB, C), jnp.float32)],
        ),
        compiler_params=pltpu.CompilerParams(
            dimension_semantics=("parallel", "arbitrary"),
            vmem_limit_bytes=32 * 1024 * 1024,
        ),
    )(x_pad, gid, wb, bb, finms, wfc, bfc)

    return out[:B, :num_classes]


def init_params(key, in_channels, feature_dim, num_groups, num_classes=14):
    k1, k2, k3, k4 = jax.random.split(key, 4)
    return {
        # synthetic base model (GAP + Linear(C, feature_dim))
        "w_base": jax.random.normal(k1, (in_channels, feature_dim), jnp.float32) * 0.1,
        "b_base": jax.random.normal(k2, (1, feature_dim), jnp.float32) * 0.01,
        # FairIdentityNormalization params (PyTorch init: zeros / ones)
        "fin_mean": jnp.zeros((num_groups, feature_dim), jnp.float32),
        "fin_std": jnp.ones((num_groups, feature_dim), jnp.float32),
        # fc: Linear(feature_dim, 14), stored (in, out) for x @ W
        "w_fc": jax.random.normal(k3, (feature_dim, num_classes), jnp.float32) * 0.1,
        "b_fc": jax.random.normal(k4, (1, num_classes), jnp.float32) * 0.01,
    }


def reference_forward(x_nchw, identity_group, params):
    """Pure-JAX f32 reference matching the PyTorch forward semantics."""
    B, C, H, W = x_nchw.shape
    gap = jnp.mean(x_nchw.reshape(B, C, H * W), axis=-1)
    feats = gap @ params["w_base"] + params["b_base"]
    mean = params["fin_mean"][identity_group]
    std = params["fin_std"][identity_group]
    normed = (feats - mean) / (std + 1e-5)
    return normed @ params["w_fc"] + params["b_fc"]


if __name__ == "__main__":
    key = jax.random.PRNGKey(0)
    kx, kg, kp = jax.random.split(key, 3)

    # Small shapes consistent with the module: NCHW image, per-sample group id.
    B, C, H, W = 2, 4, 16, 16
    feature_dim = 32
    num_groups = 3

    x = jax.random.normal(kx, (B, C, H, W), jnp.float32)
    identity_group = jax.random.randint(kg, (B,), 0, num_groups, jnp.int32)
    params = init_params(kp, C, feature_dim, num_groups)

    out = fair_chest_xray_forward(x, identity_group, params)
    out = jax.block_until_ready(out)

    ref = reference_forward(x, identity_group, params)
    assert out.shape == (B, 14), out.shape
    # bf16 input DMA + approx reciprocal => slightly looser tolerance vs exact-f32 ref.
    assert jnp.allclose(out, ref, atol=5e-3, rtol=5e-2), (
        f"max abs err {jnp.max(jnp.abs(out - ref))}"
    )
    print("KERNEL_OK")
</pallas_src>

<mosaic_0001>
module attributes {stable_mosaic.version = 11 : i64} {
  func.func @fair_chest_xray_kernel(%arg0: i32, %arg1: i32, %arg2: memref<8x4x256xbf16, #tpu.memory_space<vmem>>, %arg3: memref<8x1xi32, #tpu.memory_space<vmem>>, %arg4: memref<4x32xf32, #tpu.memory_space<vmem>>, %arg5: memref<1x32xf32, #tpu.memory_space<vmem>>, %arg6: memref<3x64xf32, #tpu.memory_space<vmem>>, %arg7: memref<32x128xf32, #tpu.memory_space<vmem>>, %arg8: memref<1x128xf32, #tpu.memory_space<vmem>>, %arg9: memref<8x128xf32, #tpu.memory_space<vmem>>, %arg10: memref<8x4xf32, #tpu.memory_space<vmem>>) attributes {dimension_semantics = [#tpu.dimension_semantics<parallel>, #tpu.dimension_semantics<arbitrary>], iteration_bounds = array<i64: 1, 1>, scalar_prefetch = 0 : i64, scratch_operands = 1 : i64, tpu.core_type = #tpu.core_type<tc>, window_params = [{transform_indices = @transform_0, window_bounds = array<i64: 8, 4, 256>}, {transform_indices = @transform_1, window_bounds = array<i64: 8, 1>}, {pipeline_mode = #tpu.pipeline_mode<synchronous>, transform_indices = @transform_2, window_bounds = array<i64: 4, 32>}, {pipeline_mode = #tpu.pipeline_mode<synchronous>, transform_indices = @transform_3, window_bounds = array<i64: 1, 32>}, {pipeline_mode = #tpu.pipeline_mode<synchronous>, transform_indices = @transform_4, window_bounds = array<i64: 3, 64>}, {pipeline_mode = #tpu.pipeline_mode<synchronous>, transform_indices = @transform_5, window_bounds = array<i64: 32, 128>}, {pipeline_mode = #tpu.pipeline_mode<synchronous>, transform_indices = @transform_6, window_bounds = array<i64: 1, 128>}, {transform_indices = @transform_7, window_bounds = array<i64: 8, 128>}]} {
    %c0_i32 = arith.constant 0 : i32
    %0 = arith.cmpi eq, %arg1, %c0_i32 : i32
    %1 = arith.extui %0 : i1 to i32
    %c0_i32_0 = arith.constant 0 : i32
    %2 = arith.cmpi ne, %1, %c0_i32_0 : i32
    scf.if %2 {
      %cst_9 = arith.constant 0.000000e+00 : f32
      %12 = vector.broadcast %cst_9 : f32 to vector<8x4xf32>
      %c0_10 = arith.constant 0 : index
      %c0_11 = arith.constant 0 : index
      %13 = vector.load %arg10[%c0_10, %c0_11] : memref<8x4xf32, #tpu.memory_space<vmem>>, vector<8x4xf32>
      tpu.vector_store %arg10[%c0_10, %c0_11], %12 {strides = array<i32>} : memref<8x4xf32, #tpu.memory_space<vmem>>, vector<8x4xf32>,
    } else {
    }
    %c0 = arith.constant 0 : index
    %c0_1 = arith.constant 0 : index
    %3 = vector.load %arg10[%c0, %c0_1] : memref<8x4xf32, #tpu.memory_space<vmem>>, vector<8x4xf32>
    %c0_2 = arith.constant 0 : index
    %c0_3 = arith.constant 0 : index
    %c0_4 = arith.constant 0 : index
    %4 = vector.load %arg2[%c0_2, %c0_3, %c0_4] : memref<8x4x256xbf16, #tpu.memory_space<vmem>>, vector<8x4x256xbf16>
    %5 = arith.extf %4 : vector<8x4x256xbf16> to vector<8x4x256xf32>
    %cst = arith.constant dense<0.000000e+00> : vector<8x4xf32>
    %6 = vector.multi_reduction <add>, %5, %cst [2] : vector<8x4x256xf32> to vector<8x4xf32>
    %7 = arith.addf %3, %6 : vector<8x4xf32>
    %c0_5 = arith.constant 0 : index
    %c0_6 = arith.constant 0 : index
    %8 = vector.load %arg10[%c0_5, %c0_6] : memref<8x4xf32, #tpu.memory_space<vmem>>, vector<8x4xf32>
    tpu.vector_store %arg10[%c0_5, %c0_6], %7 {strides = array<i32>} : memref<8x4xf32, #tpu.memory_space<vmem>>, vector<8x4xf32>,
    %c0_i32_7 = arith.constant 0 : i32
    %9 = arith.cmpi eq, %arg1, %c0_i32_7 : i32
    %10 = arith.extui %9 : i1 to i32
    %c0_i32_8 = arith.constant 0 : i32
    %11 = arith.cmpi ne, %10, %c0_i32_8 : i32
    scf.if %11 {
      %c0_9 = arith.constant 0 : index
      %c0_10 = arith.constant 0 : index
      %12 = vector.load %arg10[%c0_9, %c0_10] : memref<8x4xf32, #tpu.memory_space<vmem>>, vector<8x4xf32>
      %c0_11 = arith.constant 0 : index
      %c0_12 = arith.constant 0 : index
      %13 = vector.load %arg4[%c0_11, %c0_12] : memref<4x32xf32, #tpu.memory_space<vmem>>, vector<4x32xf32>
      %cst_13 = arith.constant dense<0.000000e+00> : vector<8x32xf32>
      %14 = tpu.matmul %12, %13, %cst_13 {dimension_numbers = #tpu.dot_dimension_numbers<[1], [0], [0], [1], [0, 0, 1, 1], [], []>} : vector<8x4xf32>, vector<4x32xf32>, vector<8x32xf32> -> vector<8x32xf32>
      %c0_14 = arith.constant 0 : index
      %c0_15 = arith.constant 0 : index
      %15 = vector.load %arg5[%c0_14, %c0_15] : memref<1x32xf32, #tpu.memory_space<vmem>>, vector<1x32xf32>
      %16 = vector.broadcast %15 : vector<1x32xf32> to vector<8x32xf32>
      %17 = arith.addf %14, %16 : vector<8x32xf32>
      %c0_16 = arith.constant 0 : index
      %c0_17 = arith.constant 0 : index
      %18 = vector.load %arg3[%c0_16, %c0_17] : memref<8x1xi32, #tpu.memory_space<vmem>>, vector<8x1xi32>
      %19 = tpu.iota {dimensions = array<i32: 1>} : vector<8x3xi32>
      %20 = vector.broadcast %18 : vector<8x1xi32> to vector<8x3xi32>
      %21 = arith.cmpi eq, %19, %20 : vector<8x3xi32>
      %22 = arith.extui %21 : vector<8x3xi1> to vector<8x3xi32>
      %23 = arith.sitofp %22 : vector<8x3xi32> to vector<8x3xf32>
      %c0_18 = arith.constant 0 : index
      %c0_19 = arith.constant 0 : index
      %24 = vector.load %arg6[%c0_18, %c0_19] : memref<3x64xf32, #tpu.memory_space<vmem>>, vector<3x64xf32>
      %cst_20 = arith.constant dense<0.000000e+00> : vector<8x64xf32>
      %25 = tpu.matmul %23, %24, %cst_20 {dimension_numbers = #tpu.dot_dimension_numbers<[1], [0], [0], [1], [0, 0, 1, 1], [], []>} : vector<8x3xf32>, vector<3x64xf32>, vector<8x64xf32> -> vector<8x64xf32>
      %26 = vector.extract_strided_slice %25 {offsets = [0, 0], sizes = [8, 32], strides = [1, 1]} : vector<8x64xf32> to vector<8x32xf32>
      %27 = vector.extract_strided_slice %25 {offsets = [0, 32], sizes = [8, 32], strides = [1, 1]} : vector<8x64xf32> to vector<8x32xf32>
      %28 = arith.subf %17, %26 : vector<8x32xf32>
      %cst_21 = arith.constant 9.99999974E-6 : f32
      %29 = vector.broadcast %cst_21 : f32 to vector<8x32xf32>
      %30 = arith.addf %27, %29 : vector<8x32xf32>
      %31 = tpu.reciprocal %30 {approx = true} : vector<8x32xf32> -> vector<8x32xf32>
      %32 = arith.mulf %28, %31 : vector<8x32xf32>
      %c0_22 = arith.constant 0 : index
      %c0_23 = arith.constant 0 : index
      %33 = vector.load %arg7[%c0_22, %c0_23] : memref<32x128xf32, #tpu.memory_space<vmem>>, vector<32x128xf32>
      %cst_24 = arith.constant dense<0.000000e+00> : vector<8x128xf32>
      %34 = tpu.matmul %32, %33, %cst_24 {dimension_numbers = #tpu.dot_dimension_numbers<[1], [0], [0], [1], [0, 0, 1, 1], [], []>} : vector<8x32xf32>, vector<32x128xf32>, vector<8x128xf32> -> vector<8x128xf32>
      %c0_25 = arith.constant 0 : index
      %c0_26 = arith.constant 0 : index
      %35 = vector.load %arg8[%c0_25, %c0_26] : memref<1x128xf32, #tpu.memory_space<vmem>>, vector<1x128xf32>
      %36 = vector.broadcast %35 : vector<1x128xf32> to vector<8x128xf32>
      %37 = arith.addf %34, %36 : vector<8x128xf32>
      %c0_27 = arith.constant 0 : index
      %c0_28 = arith.constant 0 : index
      %38 = vector.load %arg9[%c0_27, %c0_28] : memref<8x128xf32, #tpu.memory_space<vmem>>, vector<8x128xf32>
      tpu.vector_store %arg9[%c0_27, %c0_28], %37 {strides = array<i32>} : memref<8x128xf32, #tpu.memory_space<vmem>>, vector<8x128xf32>,
    } else {
    }
    return
  }
  func.func @transform_0(%arg0: i32, %arg1: i32) -> (i32, i32, i32) {
    %c0_i32 = arith.constant 0 : i32
    %c0_i32_0 = arith.constant 0 : i32
    return %arg0, %c0_i32, %arg1 : i32, i32, i32
  }
  func.func @transform_1(%arg0: i32, %arg1: i32) -> (i32, i32) {
    %c0_i32 = arith.constant 0 : i32
    %c0_i32_0 = arith.constant 0 : i32
    return %arg0, %c0_i32 : i32, i32
  }
  func.func @transform_2(%arg0: i32, %arg1: i32) -> (i32, i32) {
    %c0_i32 = arith.constant 0 : i32
    %c0_i32_0 = arith.constant 0 : i32
    %c0_i32_1 = arith.constant 0 : i32
    return %c0_i32, %c0_i32_0 : i32, i32
  }
  func.func @transform_3(%arg0: i32, %arg1: i32) -> (i32, i32) {
    %c0_i32 = arith.constant 0 : i32
    %c0_i32_0 = arith.constant 0 : i32
    %c0_i32_1 = arith.constant 0 : i32
    return %c0_i32, %c0_i32_0 : i32, i32
  }
  func.func @transform_4(%arg0: i32, %arg1: i32) -> (i32, i32) {
    %c0_i32 = arith.constant 0 : i32
    %c0_i32_0 = arith.constant 0 : i32
    %c0_i32_1 = arith.constant 0 : i32
    return %c0_i32, %c0_i32_0 : i32, i32
  }
  func.func @transform_5(%arg0: i32, %arg1: i32) -> (i32, i32) {
    %c0_i32 = arith.constant 0 : i32
    %c0_i32_0 = arith.constant 0 : i32
    %c0_i32_1 = arith.constant 0 : i32
    return %c0_i32, %c0_i32_0 : i32, i32
  }
  func.func @transform_6(%arg0: i32, %arg1: i32) -> (i32, i32) {
    %c0_i32 = arith.constant 0 : i32
    %c0_i32_0 = arith.constant 0 : i32
    %c0_i32_1 = arith.constant 0 : i32
    return %c0_i32, %c0_i32_0 : i32, i32
  }
  func.func @transform_7(%arg0: i32, %arg1: i32) -> (i32, i32) {
    %c0_i32 = arith.constant 0 : i32
    %c0_i32_0 = arith.constant 0 : i32
    return %arg0, %c0_i32 : i32, i32
  }
}

</mosaic_0001>

<bundles_post_ra>
// kernel: tpu_custom_call.1
= control target key start
LH: loop header
LB: loop body
LE: loop exit
PB: predicated region body
PF: predicated region fallthrough
CT: control target
= control target key end

     0   :  { %12 = vsyncpa [#allocation4], 0  ;;  %s733_s0 = inlined_call_operand.hbm [shape: bf16[8,4,256], index: 0, kind: input, shape index: {}]   ;;  %s734_s1 = inlined_call_operand.vmem [shape: s32[8,1], index: 1, kind: input, shape index: {}]   ;;  %s735_s2 = inlined_call_operand.vmem [shape: f32[4,32], index: 2, kind: input, shape index: {}]   ;;  %s736_s3 = inlined_call_operand.vmem [shape: f32[1,32], index: 3, kind: input, shape index: {}]   ;;  %s737_s4 = inlined_call_operand.vmem [shape: f32[3,64], index: 4, kind: input, shape index: {}]   ;;  %s738_s5 = inlined_call_operand.hbm [shape: f32[32,128], index: 5, kind: input, shape index: {}]   ;;  %s739_s6 = inlined_call_operand.vmem [shape: f32[1,128], index: 6, kind: input, shape index: {}]   ;;  %s740_s7 = inlined_call_operand.hbm [shape: f32[8,128], index: 7, kind: output, shape index: {}]  }
   0x1   :  { %13 = vsyncpa [#allocation7], 0 }
   0x2   :  { %14 = vsyncpa [#allocation5], 0  ;;  %s624_s24 = smov [#allocation3]  }
   0x3   :  { %s20_s25 = sshll.u32 %s624_s24, 4  ;;  %s21_s25 = int_to_ptr.vmem [resolvable:$true] %s20_s25 }
   0x4   :  { %s566_s26 = scalar_lea.vmem %s21_s25, 512  ;;  %p571_p1 = scmp.lt.s32.totalorder %s21_s25, %s21_s25 }
   0x5   :  { %p567_p0 = scmp.ne.s32.totalorder %s21_s25, %s566_s26  ;;  %p572_p2 = scmp.lt.s32.totalorder %s566_s26, %s566_s26 }
   0x7   :  { %p573_p3 = por %p572_p2, %p571_p1 }
   0x9   :  { %p574_p4 = pnand %p573_p3, %p567_p0 }
   0xb   :  { %577 = shalt.err (!%p574_p4)
}
   0xc   :  { %s625_s27 = smov 64   ;;  %s626_s28 = smov 4  }
   0xd   :  { %26 = dma.hbm_to_vmem [thread:$0]  %s733_s0, 512, %s21_s25, [#allocation4], %s625_s27, %s625_s27, %s626_s28  }
   0xe   :  { %s627_s8 = smov [#allocation6]  }
   0xf   :  { %s40_s9 = sshll.u32 %s627_s8, 4  ;;  %s41_s9 = int_to_ptr.vmem [resolvable:$true] %s40_s9 }
  0x10   :  { %s586_s10 = scalar_lea.vmem %s41_s9, 512  ;;  %p591_p6 = scmp.lt.s32.totalorder %s41_s9, %s41_s9 }
  0x11   :  { %p587_p5 = scmp.ne.s32.totalorder %s41_s9, %s586_s10  ;;  %p592_p7 = scmp.lt.s32.totalorder %s586_s10, %s586_s10 }
  0x13   :  { %p593_p8 = por %p592_p7, %p591_p6 }
  0x15   :  { %p594_p9 = pnand %p593_p8, %p587_p5 }
  0x17   :  { %597 = shalt.err (!%p594_p9)
}
  0x18   :  { %s628_s11 = smov 128   ;;  %s629_s12 = smov 8  }
  0x19   :  { %46 = dma.hbm_to_vmem [thread:$0]  %s738_s5, 512, %s41_s9, [#allocation7], %s628_s11, %s628_s11, %s629_s12  }
  0x1a   :  { %618 = dma.done.wait [#allocation4], 512  }
  0x1b   :  { %619 = vsyncadd [#allocation4], 4294966784 }
  0x1c   :  { %620 = dma.done.wait [#allocation7], 512  }
  0x1d   :  { %621 = vsyncadd [#allocation7], 4294966784  ;;  %v630_v0 = vmov 0   ;;  %v496_v1 = vld [vmem:[#allocation3] sm:$0xff]   ;;  %vm102_vm0 = vcmask 1043456   ;;  %v511_v2 = vld [vmem:[#allocation3 + $0x8] sm:$0xff]   ;;  %v151_v48 = vlaneseq }
  0x1e   :  { %555 = vset.pattern.permute.xlu0 %v630_v0  ;;  %v512_v3 = vld [vmem:[#allocation3 + $0x10] sm:$0xff]   ;;  %v497_v4 = vunpack.c.l.bf16 %v496_v1  ;;  %v501_v5 = vunpack.c.l.bf16 %v511_v2  ;;  %v498_v6 = vunpack.c.h.bf16 %v496_v1  ;;  %v502_v7 = vunpack.c.h.bf16 %v511_v2  ;;  %v513_v8 = vld [vmem:[#allocation3 + $0x18] sm:$0xff]   ;;  %s633_s18 = smov 96  }
  0x1f   :  { %v505_v9 = vunpack.c.l.bf16 %v512_v3  ;;  %v506_v10 = vunpack.c.h.bf16 %v512_v3  ;;  %v509_v11 = vunpack.c.l.bf16 %v513_v8  ;;  %v510_v19 = vunpack.c.h.bf16 %v513_v8  ;;  %v207_v46 = vld [vmem:[%s735_s2] sm:$0xf] }
  0x20   :  { %v86_v12 = vcombine.high %v497_v4, %v497_v4  ;;  %v103_v13 = vsel %vm102_vm0, %v497_v4, 0.0  ;;  %v88_v14 = vcombine.high %v501_v5, %v501_v5  ;;  %v113_v15 = vsel %vm102_vm0, %v501_v5, 0.0  ;;  %v291_v47 = vld [vmem:[%s734_s1] sm:$0xff] }
  0x21   :  { %v87_v16 = vcombine.high %v498_v6, %v498_v6  ;;  %v108_v17 = vsel %vm102_vm0, %v498_v6, 0.0  ;;  %v89_v18 = vcombine.high %v502_v7, %v502_v7  ;;  %v118_v22 = vsel %vm102_vm0, %v502_v7, 0.0 }
  0x22   :  { %v104_v20 = vsel %vm102_vm0, %v86_v12, 0.0  ;;  %v114_v21 = vsel %vm102_vm0, %v88_v14, 0.0  ;;  %v90_v23 = vcombine.high %v505_v9, %v505_v9  ;;  %v91_v28 = vcombine.high %v506_v10, %v506_v10  ;;  %v298_v14 = vld [vmem:[%s737_s4] sm:$0x7] }
  0x23   :  { %v105_v24 = vadd.f32 %v104_v20, %v103_v13  ;;  %v115_v25 = vadd.f32 %v114_v21, %v113_v15  ;;  %v109_v26 = vsel %vm102_vm0, %v87_v16, 0.0  ;;  %v119_v27 = vsel %vm102_vm0, %v89_v18, 0.0  ;;  %v387_v18 = vld [vmem:[#allocation6 + $0x10] sm:$0xff]  ;;  %v487_v20 = vld [vmem:[%s736_s3] ss:$0 sm:$0xff]  ;;  %s634_s3 = smov [#allocation8]  }
  0x24   :  { %v110_v29 = vadd.f32 %v109_v26, %v108_v17  ;;  %v120_v30 = vadd.f32 %v119_v27, %v118_v22  ;;  %v123_v31 = vsel %vm102_vm0, %v505_v9, 0.0  ;;  %v124_v32 = vsel %vm102_vm0, %v90_v23, 0.0  ;;  %v388_v17 = vld [vmem:[#allocation6 + $0x18] sm:$0xff]  ;;  %s477_s21 = sshll.u32 %s634_s3, 4  ;;  %s478_s21 = int_to_ptr.vmem [resolvable:$true] %s477_s21 }
  0x25   :  { %106 = vadd.xlane.f32.xlu0 %v105_v24  ;;  %116 = vadd.xlane.f32.xlu1 %v115_v25  ;;  %v128_v33 = vsel %vm102_vm0, %v506_v10, 0.0  ;;  %v129_v34 = vsel %vm102_vm0, %v91_v28, 0.0  ;;  %v92_v35 = vcombine.high %v509_v11, %v509_v11  ;;  %v93_v36 = vcombine.high %v510_v19, %v510_v19  ;;  %v385_v28 = vld [vmem:[#allocation6] sm:$0xff]  ;;  %s598_s22 = scalar_lea.vmem %s478_s21, 128  ;;  %p603_p11 = scmp.lt.s32.totalorder %s478_s21, %s478_s21 }
  0x26   :  { %v125_v37 = vadd.f32 %v124_v32, %v123_v31  ;;  %v130_v38 = vadd.f32 %v129_v34, %v128_v33  ;;  %v133_v39 = vsel %vm102_vm0, %v509_v11, 0.0  ;;  %v138_v41 = vsel %vm102_vm0, %v510_v19, 0.0  ;;  %v386_v19 = vld [vmem:[#allocation6 + $0x8] sm:$0xff]  ;;  %v493_v32 = vld [vmem:[%s739_s6] ss:$0 sm:$0xff]  ;;  %p599_p10 = scmp.ne.s32.totalorder %s478_s21, %s598_s22  ;;  %p604_p12 = scmp.lt.s32.totalorder %s598_s22, %s598_s22 }
  0x27   :  { %v134_v40 = vsel %vm102_vm0, %v92_v35, 0.0  ;;  %v139_v42 = vsel %vm102_vm0, %v93_v36, 0.0  ;;  %vm59_vm1 = vcmask 31744   ;;  %v631_v45 = vmov 0.0  }
  0x28   :  { %v135_v43 = vadd.f32 %v134_v40, %v133_v39  ;;  %v140_v44 = vadd.f32 %v139_v42, %v138_v41  ;;  %523 = vmatprep.subr.mxu1 %v631_v45  ;;  %60 = vst.msk [vmem:[#allocation2] sm:$0xff] %vm59_vm1, %v631_v45  ;;  %533 = vmatprep.subr.mxu0 %v631_v45  ;;  %vm632_vm2 = vmmov 0   ;;  %v152_v49 = vand.u32 127, %v151_v48  ;;  %p605_p13 = por %p604_p12, %p603_p11 }
  0x29   :  { %111 = vadd.xlane.f32.xlu0 %v110_v29  ;;  %121 = vadd.xlane.f32.xlu1 %v120_v30  ;;  %v154_v50 = vshrl.u32 %v151_v48, 7  ;;  %vm185_vm3 = vcmask 1041409   ;;  %vm187_vm4 = vcmask 1042434   ;;  %vm189_vm5 = vcmask 1043459  }
  0x2a   :  { %524 = vmatpush3.msk.msra.mxu1 %vm102_vm0, %v207_v46  ;;  %525 = vmatprep.mubr.msk.f32.mxu1 %vm632_vm2, %v631_v45  ;;  %vm191_vm6 = vcmask 1044484   ;;  %vm193_vm7 = vcmask 1045509   ;;  %vm195_vm8 = vcmask 1046534   ;;  %vm197_vm9 = vcmask 1047559   ;;  %p606_p0 = pnand %p605_p13, %p599_p10 }
  0x2b   :  { %528 = vmatprep.subr.mxu1 %v631_v45  ;;  %541 = vmatprep.mubr.msk.f32.mxu0 %vm632_vm2, %v631_v45  ;;  %v155_v53 = vsub.s32 %v152_v49, %v154_v50  ;;  %vm303_vm10 = vcmask 1042432   ;;  %vm299_vm12 = vcmask 23552   ;;  %vm396_vm13 = vcmask 261120  }
  0x2c   :  { %534 = vmatpush3.msra.mxu0 %v388_v17 }
  0x2d   :  { %126 = vadd.xlane.f32.xlu0 %v125_v37  ;;  %131 = vadd.xlane.f32.xlu1 %v130_v38 }
  0x2e   :  { %535 = vmatprep.subr.mxu0 %v631_v45 }
  0x2f   :  { %v61_v9 = vld [vmem:[#allocation2] sm:$0xff]  ;;  %536 = vmatpush3.msra.mxu0 %v387_v18 }
  0x30   :  { %537 = vmatprep.subr.mxu0 %v631_v45 }
  0x31   :  { %136 = vadd.xlane.f32.xlu0 %v135_v43  ;;  %141 = vadd.xlane.f32.xlu1 %v140_v44 }
  0x32   :  { %538 = vmatpush3.msra.mxu0 %v386_v19 }
  0x33   :  { %539 = vmatprep.subr.mxu0 %v631_v45 }
  0x34   :  { %540 = vmatpush3.msra.mxu0 %v385_v28 }
  0x47   :  { %293 = vperm.xlu0 %555, %v291_v47  }
  0xae   :  { %v107_v51 = vpop.xlane.xlu0 %106  ;;  %v117_v52 = vpop.xlane.xlu1 %116 }
  0xaf   :  { %v156_v56 = vrot.slane %v107_v51, %v155_v53  ;;  %v164_v59 = vrot.slane %v117_v52, %v155_v53 }
  0xb2   :  { %v112_v54 = vpop.xlane.xlu0 %111  ;;  %v122_v55 = vpop.xlane.xlu1 %121 }
  0xb3   :  { %v160_v57 = vrot.slane %v112_v54, %v155_v53  ;;  %v168_v58 = vrot.slane %v122_v55, %v155_v53 }
  0xb5   :  { %v186_v60 = vsel %vm185_vm3, %v160_v57, %v156_v56 }
  0xb6   :  { %v188_v61 = vsel %vm187_vm4, %v164_v59, %v186_v60  ;;  %v127_v62 = vpop.xlane.xlu0 %126  ;;  %v132_v63 = vpop.xlane.xlu1 %131 }
  0xb7   :  { %v190_v0 = vsel %vm189_vm5, %v168_v58, %v188_v61  ;;  %v172_v1 = vrot.slane %v127_v62, %v155_v53  ;;  %v176_v2 = vrot.slane %v132_v63, %v155_v53 }
  0xb9   :  { %v192_v3 = vsel %vm191_vm6, %v172_v1, %v190_v0 }
  0xba   :  { %v137_v4 = vpop.xlane.xlu0 %136  ;;  %v142_v5 = vpop.xlane.xlu1 %141  ;;  %v194_v8 = vsel %vm193_vm7, %v176_v2, %v192_v3 }
  0xbb   :  { %v180_v6 = vrot.slane %v137_v4, %v155_v53  ;;  %v184_v7 = vrot.slane %v142_v5, %v155_v53 }
  0xbd   :  { %v196_v10 = vsel %vm195_vm8, %v180_v6, %v194_v8 }
  0xbe   :  { %v198_v11 = vsel %vm197_vm9, %v184_v7, %v196_v10 }
  0xbf   :  { %v200_v12 = vadd.f32 %v198_v11, %v61_v9 }
  0xc1   :  { %202 = vst.msk [vmem:[#allocation2] sm:$0xff] %vm59_vm1, %v200_v12 }
  0xc2   :  { %v294_v13 = vpop.permute.xlu0 %293 }
  0xc3   :  { %vm295_vm11 = vcmp.eq.s32.totalorder %v152_v49, %v294_v13 }
  0xc4   :  { %v490_v16 = vsel %vm295_vm11, 1.0, %v631_v45 }
  0xc8   :  { %v206_v15 = vld [vmem:[#allocation2] sm:$0xff] }
  0xc9   :  { %526 = vmatmul.mubr.msk.f32.vlgmr.msra.gmra.mxu1 %vm59_vm1, %v206_v15 }
  0xca   :  { %529 = vmatpush3.msk.msra.mxu1 %vm303_vm10, %v298_v14  ;;  %530 = vmatprep.mubr.msk.f32.mxu1 %vm632_vm2, %v631_v45 }
  0xcd   :  { %531 = vmatmul.mubr.msk.f32.vlgmr.msra.gmra.mxu1 %vm299_vm12, %v490_v16 }
 0x189   :  { %v287_v21 = vpop.f32.mrf.mxu1 }
 0x18a   :  { %v288_v23 = vadd.f32 %v487_v20, %v287_v21 }
 0x18b   :  { %v527_v22 = vpop.f32.mrf.mxu1 }
 0x18d   :  { %v373_v24 = vpop.f32.mrf.mxu1 }
 0x18e   :  { %v377_v25 = vsub.f32 %v288_v23, %v373_v24  ;;  %v378_v26 = vadd.f32 1e-05, %v373_v24 }
 0x18f   :  { %v532_v27 = vpop.f32.mrf.mxu1 }
 0x190   :  { %556 = vrcp.f32 %v378_v26 }
 0x19d   :  { %v557_v29 = vpop.eup %556 }
 0x19e   :  { %381 = vrot.lane.b32.xlu1 %v557_v29, %s633_s18 }
 0x210   :  { %v382_v30 = vpop.permute.xlu1 %381 }
 0x211   :  { %v384_v31 = vmul.f32 %v382_v30, %v377_v25 }
 0x213   :  { %542 = vmatmul.mubr.msk.f32.vlgmr.msra.gmra.mxu0 %vm396_vm13, %v384_v31 }
 0x2d3   :  { %v466_v33 = vpop.f32.mrf.mxu0 }
 0x2d4   :  { %v467_v34 = vadd.f32 %v493_v32, %v466_v33 }
 0x2d5   :  { %v543_v35 = vpop.f32.mrf.mxu0 }
 0x2d6   :  { %470 = vst [vmem:[#allocation8] sm:$0xff] %v467_v34 }
 0x2d7   :  { %609 = shalt.err (!%p606_p0)
}
 0x2d8   :  { %480 = dma.vmem_to_hbm [thread:$0]  %s478_s21, 128, %s740_s7, [#allocation5]  }
 0x2d9   :  { %622 = dma.done.wait [#allocation5], 128  }
 0x2da   :  { %623 = vsyncadd [#allocation5], 4294967168 }
 0x2db   :  { %484 = vsyncpa [#allocation4], 1 }
 0x2dc   :  { %485 = vsyncpa [#allocation7], 1 }
 0x2dd   :  { %486 = vsyncpa [#allocation5], 1 }

</bundles_post_ra>
